<compile_context>
chip_gen: v5e
topology: v5e:2x2
jax: 0.10.0
libtpu: 0.0.40
codegen_flags: <defaults>
</compile_context>

<pallas_src>
import numpy as np
import jax
import jax.numpy as jnp
from jax.experimental import pallas as pl
from jax.experimental.pallas import tpu as pltpu


# ---------------------------------------------------------------------------
# PyTorch-style bilinear (align_corners=False) interpolation matrix (NumPy).
# ---------------------------------------------------------------------------
def _bilinear_matrix(out_size: int, in_size: int) -> np.ndarray:
    scale = in_size / out_size
    i = np.arange(out_size, dtype=np.float64)
    src = scale * (i + 0.5) - 0.5
    src = np.maximum(src, 0.0)                      # PyTorch clamps negatives to 0
    i0 = np.minimum(np.floor(src).astype(np.int64), in_size - 1)
    i1 = np.minimum(i0 + 1, in_size - 1)
    frac = np.clip(src - i0, 0.0, 1.0)
    A = np.zeros((out_size, in_size), dtype=np.float32)
    A[np.arange(out_size), i0] += (1.0 - frac).astype(np.float32)
    A[np.arange(out_size), i1] += frac.astype(np.float32)
    return A


# ---------------------------------------------------------------------------
# Fused kernel factory: for each scale, bilinear resize (one MXU matmul) followed
# by the elementwise multiply with the skip tensor.  All scales run inside one
# kernel body / one grid step.
# ---------------------------------------------------------------------------
def _make_fused_kernel(num_scales: int):
    def kernel(*refs):
        # refs = [w_sel_0, m_t_0, skip_0, ..., w_sel_{S-1}, m_t_{S-1}, skip_{S-1},
        #         out_0, ..., out_{S-1}]
        n_in = 3 * num_scales
        for s in range(num_scales):
            w_ref = refs[3 * s + 0]        # (b*c, Hin*Win)  gathered raw weight rows
            m_ref = refs[3 * s + 1]        # (Hin*Win, x*x)  kron(A_h, A_w)^T
            sk_ref = refs[3 * s + 2]       # (b*c, x*x)
            o_ref = refs[n_in + s]         # (b*c, x*x)
            wfull = jnp.dot(w_ref[...], m_ref[...],
                            preferred_element_type=jnp.float32)
            o_ref[...] = (sk_ref[...].astype(jnp.float32) * wfull).astype(o_ref.dtype)
    return kernel


# ---------------------------------------------------------------------------
# Module-equivalent forward.
# ---------------------------------------------------------------------------
def u_attention_dense_forward(weights, skips, dims, features, batch_cnt):
    n, cw, hin, win = weights.shape
    assert n == 1, "reshape in create_weight_list implies weights batch == 1"
    hw = hin * win
    w_flat = weights.reshape(cw, hw)

    num_scales = len(dims)
    args, in_specs, out_shapes, out_specs, meta = [], [], [], [], []
    flops = 0
    bytes_accessed = 0

    for x, c, b, sk in zip(dims, features, batch_cnt, skips):
        assert cw >= b, "slice [:, :, :b] requires weights channels >= batch_cnt"
        bc, xx = b * c, x * x

        # create_weight_list gather: flat (p, q) position r = p*c + q -> channel r % b.
        idx = np.arange(bc, dtype=np.int32) % b
        w_sel = w_flat[idx]                                               # (bc, hw)

        # Bilinear upsample as one matrix: resized_flat = w_sel @ M^T.
        m_t = jnp.asarray(
            np.ascontiguousarray(
                np.kron(_bilinear_matrix(x, hin), _bilinear_matrix(x, win)).T))

        sk2 = sk.reshape(bc, xx)                     # lane-major output layout

        args += [w_sel, m_t, sk2]
        in_specs += [
            pl.BlockSpec((bc, hw), lambda i: (0, 0)),
            pl.BlockSpec((hw, xx), lambda i: (0, 0)),
            pl.BlockSpec((bc, xx), lambda i: (0, 0)),
        ]
        out_shapes.append(jax.ShapeDtypeStruct((bc, xx), sk.dtype))
        out_specs.append(pl.BlockSpec((bc, xx), lambda i: (0, 0)))
        meta.append((b, c, x))

        itemsize = int(np.dtype(sk.dtype).itemsize)
        flops += 2 * bc * hw * xx + bc * xx
        bytes_accessed += 4 * (bc * hw + hw * xx) + 2 * bc * xx * itemsize

    outs2 = pl.pallas_call(
        _make_fused_kernel(num_scales),
        out_shape=tuple(out_shapes),
        grid=(1,),
        in_specs=in_specs,
        out_specs=tuple(out_specs),
        compiler_params=pltpu.CompilerParams(dimension_semantics=("arbitrary",)),
        cost_estimate=pl.CostEstimate(
            flops=flops, transcendentals=0, bytes_accessed=bytes_accessed),
    )(*args)

    if not isinstance(outs2, (list, tuple)):
        outs2 = (outs2,)
    return [o.reshape(b, c, x, x) for o, (b, c, x) in zip(outs2, meta)]


# ---------------------------------------------------------------------------
# Pure-JAX reference (mirrors the PyTorch code path) for verification.
# ---------------------------------------------------------------------------
def reference_forward(weights, skips, dims, features, batch_cnt):
    outs = []
    n, cw, hin, win = weights.shape
    for x, c, b, sk in zip(dims, features, batch_cnt, skips):
        a_h = jnp.asarray(_bilinear_matrix(x, hin))
        a_w = jnp.asarray(_bilinear_matrix(x, win))
        res = jnp.einsum("oh,nchw,pw->ncop", a_h, weights, a_w)   # (N, Cw, x, x)
        stacked = jnp.stack([res] * c, axis=1)                    # (N, c, Cw, x, x)
        if stacked.shape[2] != b:
            stacked = stacked[:, :, :b]
        wfull = stacked.reshape(b, c, x, x)
        outs.append(sk * wfull)
    return outs


if __name__ == "__main__":
    dims = [16, 8]
    features = [4, 8]
    batch_cnt = [2, 3]
    N, Cw, Hin, Win = 1, 3, 8, 8

    key = jax.random.PRNGKey(0)
    k1, k2, k3 = jax.random.split(key, 3)
    weights = jax.random.normal(k1, (N, Cw, Hin, Win), jnp.float32)
    skips = [
        jax.random.normal(k2, (batch_cnt[0], features[0], dims[0], dims[0]), jnp.float32),
        jax.random.normal(k3, (batch_cnt[1], features[1], dims[1], dims[1]), jnp.float32),
    ]

    outs = u_attention_dense_forward(weights, skips, dims, features, batch_cnt)
    outs = jax.block_until_ready(outs)

    refs = reference_forward(weights, skips, dims, features, batch_cnt)
    for o, r in zip(outs, refs):
        np.testing.assert_allclose(np.asarray(o), np.asarray(r), rtol=1e-5, atol=1e-5)

    print("KERNEL_OK")
</pallas_src>

<mosaic_0001>
module attributes {stable_mosaic.version = 11 : i64} {
  func.func @kernel(%arg0: i32, %arg1: memref<8x64xf32, #tpu.memory_space<vmem>>, %arg2: memref<64x256xf32, #tpu.memory_space<vmem>>, %arg3: memref<8x256xf32, #tpu.memory_space<vmem>>, %arg4: memref<24x64xf32, #tpu.memory_space<vmem>>, %arg5: memref<64x64xf32, #tpu.memory_space<vmem>>, %arg6: memref<24x64xf32, #tpu.memory_space<vmem>>, %arg7: memref<8x256xf32, #tpu.memory_space<vmem>>, %arg8: memref<24x64xf32, #tpu.memory_space<vmem>>) attributes {dimension_semantics = [#tpu.dimension_semantics<arbitrary>], iteration_bounds = array<i64: 1>, scalar_prefetch = 0 : i64, scratch_operands = 0 : i64, tpu.core_type = #tpu.core_type<tc>, window_params = [{pipeline_mode = #tpu.pipeline_mode<synchronous>, transform_indices = @transform_0, window_bounds = array<i64: 8, 64>}, {pipeline_mode = #tpu.pipeline_mode<synchronous>, transform_indices = @transform_1, window_bounds = array<i64: 64, 256>}, {pipeline_mode = #tpu.pipeline_mode<synchronous>, transform_indices = @transform_2, window_bounds = array<i64: 8, 256>}, {pipeline_mode = #tpu.pipeline_mode<synchronous>, transform_indices = @transform_3, window_bounds = array<i64: 24, 64>}, {pipeline_mode = #tpu.pipeline_mode<synchronous>, transform_indices = @transform_4, window_bounds = array<i64: 64, 64>}, {pipeline_mode = #tpu.pipeline_mode<synchronous>, transform_indices = @transform_5, window_bounds = array<i64: 24, 64>}, {pipeline_mode = #tpu.pipeline_mode<synchronous>, transform_indices = @transform_6, window_bounds = array<i64: 8, 256>}, {pipeline_mode = #tpu.pipeline_mode<synchronous>, transform_indices = @transform_7, window_bounds = array<i64: 24, 64>}]} {
    %c0 = arith.constant 0 : index
    %c0_0 = arith.constant 0 : index
    %0 = vector.load %arg1[%c0, %c0_0] : memref<8x64xf32, #tpu.memory_space<vmem>>, vector<8x64xf32>
    %c0_1 = arith.constant 0 : index
    %c0_2 = arith.constant 0 : index
    %1 = vector.load %arg2[%c0_1, %c0_2] : memref<64x256xf32, #tpu.memory_space<vmem>>, vector<64x256xf32>
    %cst = arith.constant dense<0.000000e+00> : vector<8x256xf32>
    %2 = tpu.matmul %0, %1, %cst {dimension_numbers = #tpu.dot_dimension_numbers<[1], [0], [0], [1], [0, 0, 1, 1], [], []>} : vector<8x64xf32>, vector<64x256xf32>, vector<8x256xf32> -> vector<8x256xf32>
    %c0_3 = arith.constant 0 : index
    %c0_4 = arith.constant 0 : index
    %3 = vector.load %arg3[%c0_3, %c0_4] : memref<8x256xf32, #tpu.memory_space<vmem>>, vector<8x256xf32>
    %4 = arith.mulf %3, %2 : vector<8x256xf32>
    %c0_5 = arith.constant 0 : index
    %c0_6 = arith.constant 0 : index
    %5 = vector.load %arg7[%c0_5, %c0_6] : memref<8x256xf32, #tpu.memory_space<vmem>>, vector<8x256xf32>
    tpu.vector_store %arg7[%c0_5, %c0_6], %4 {strides = array<i32>} : memref<8x256xf32, #tpu.memory_space<vmem>>, vector<8x256xf32>,
    %c0_7 = arith.constant 0 : index
    %c0_8 = arith.constant 0 : index
    %6 = vector.load %arg4[%c0_7, %c0_8] : memref<24x64xf32, #tpu.memory_space<vmem>>, vector<24x64xf32>
    %c0_9 = arith.constant 0 : index
    %c0_10 = arith.constant 0 : index
    %7 = vector.load %arg5[%c0_9, %c0_10] : memref<64x64xf32, #tpu.memory_space<vmem>>, vector<64x64xf32>
    %cst_11 = arith.constant dense<0.000000e+00> : vector<24x64xf32>
    %8 = tpu.matmul %6, %7, %cst_11 {dimension_numbers = #tpu.dot_dimension_numbers<[1], [0], [0], [1], [0, 0, 1, 1], [], []>} : vector<24x64xf32>, vector<64x64xf32>, vector<24x64xf32> -> vector<24x64xf32>
    %c0_12 = arith.constant 0 : index
    %c0_13 = arith.constant 0 : index
    %9 = vector.load %arg6[%c0_12, %c0_13] : memref<24x64xf32, #tpu.memory_space<vmem>>, vector<24x64xf32>
    %10 = arith.mulf %9, %8 : vector<24x64xf32>
    %c0_14 = arith.constant 0 : index
    %c0_15 = arith.constant 0 : index
    %11 = vector.load %arg8[%c0_14, %c0_15] : memref<24x64xf32, #tpu.memory_space<vmem>>, vector<24x64xf32>
    tpu.vector_store %arg8[%c0_14, %c0_15], %10 {strides = array<i32>} : memref<24x64xf32, #tpu.memory_space<vmem>>, vector<24x64xf32>,
    return
  }
  func.func @transform_0(%arg0: i32) -> (i32, i32) {
    %c0_i32 = arith.constant 0 : i32
    %c0_i32_0 = arith.constant 0 : i32
    %c0_i32_1 = arith.constant 0 : i32
    return %c0_i32, %c0_i32_0 : i32, i32
  }
  func.func @transform_1(%arg0: i32) -> (i32, i32) {
    %c0_i32 = arith.constant 0 : i32
    %c0_i32_0 = arith.constant 0 : i32
    %c0_i32_1 = arith.constant 0 : i32
    return %c0_i32, %c0_i32_0 : i32, i32
  }
  func.func @transform_2(%arg0: i32) -> (i32, i32) {
    %c0_i32 = arith.constant 0 : i32
    %c0_i32_0 = arith.constant 0 : i32
    %c0_i32_1 = arith.constant 0 : i32
    return %c0_i32, %c0_i32_0 : i32, i32
  }
  func.func @transform_3(%arg0: i32) -> (i32, i32) {
    %c0_i32 = arith.constant 0 : i32
    %c0_i32_0 = arith.constant 0 : i32
    %c0_i32_1 = arith.constant 0 : i32
    return %c0_i32, %c0_i32_0 : i32, i32
  }
  func.func @transform_4(%arg0: i32) -> (i32, i32) {
    %c0_i32 = arith.constant 0 : i32
    %c0_i32_0 = arith.constant 0 : i32
    %c0_i32_1 = arith.constant 0 : i32
    return %c0_i32, %c0_i32_0 : i32, i32
  }
  func.func @transform_5(%arg0: i32) -> (i32, i32) {
    %c0_i32 = arith.constant 0 : i32
    %c0_i32_0 = arith.constant 0 : i32
    %c0_i32_1 = arith.constant 0 : i32
    return %c0_i32, %c0_i32_0 : i32, i32
  }
  func.func @transform_6(%arg0: i32) -> (i32, i32) {
    %c0_i32 = arith.constant 0 : i32
    %c0_i32_0 = arith.constant 0 : i32
    %c0_i32_1 = arith.constant 0 : i32
    return %c0_i32, %c0_i32_0 : i32, i32
  }
  func.func @transform_7(%arg0: i32) -> (i32, i32) {
    %c0_i32 = arith.constant 0 : i32
    %c0_i32_0 = arith.constant 0 : i32
    %c0_i32_1 = arith.constant 0 : i32
    return %c0_i32, %c0_i32_0 : i32, i32
  }
}

</mosaic_0001>

<bundles_post_ra>
// kernel: tpu_custom_call.1
= control target key start
LH: loop header
LB: loop body
LE: loop exit
PB: predicated region body
PF: predicated region fallthrough
CT: control target
= control target key end

     0   :  { %13 = vsyncpa [#allocation3], 0  ;;  %s602_s0 = inlined_call_operand.hbm [shape: f32[8,64], index: 0, kind: input, shape index: {}]   ;;  %s603_s1 = inlined_call_operand.hbm [shape: f32[64,256], index: 1, kind: input, shape index: {}]   ;;  %s604_s2 = inlined_call_operand.hbm [shape: f32[8,256], index: 2, kind: input, shape index: {}]   ;;  %s605_s3 = inlined_call_operand.hbm [shape: f32[24,64], index: 3, kind: input, shape index: {}]   ;;  %s606_s4 = inlined_call_operand.hbm [shape: f32[64,64], index: 4, kind: input, shape index: {}]   ;;  %s607_s5 = inlined_call_operand.hbm [shape: f32[24,64], index: 5, kind: input, shape index: {}]   ;;  %s608_s6 = inlined_call_operand.hbm [shape: f32[8,256], index: 6, kind: output, shape index: {0}]   ;;  %s609_s7 = inlined_call_operand.hbm [shape: f32[24,64], index: 7, kind: output, shape index: {1}]  }
   0x1   :  { %14 = vsyncpa [#allocation6], 0 }
   0x2   :  { %15 = vsyncpa [#allocation9], 0 }
   0x3   :  { %16 = vsyncpa [#allocation12], 0 }
   0x4   :  { %17 = vsyncpa [#allocation4], 0  ;;  %s34_s26 = sshll.u32 %s603_s1, 4  ;;  %s35_s26 = int_to_ptr.hbm [resolvable:$true] %s34_s26 }
   0x5   :  { %18 = vsyncpa [#allocation15], 0  ;;  %s506_s27 = smov [#allocation5]   ;;  %s58_s8 = sshll.u32 %s605_s3, 4  ;;  %s59_s8 = int_to_ptr.hbm [resolvable:$true] %s58_s8 }
   0x6   :  { %s36_s28 = sshll.u32 %s506_s27, 4  ;;  %s507_s9 = smov 256   ;;  %s37_s28 = int_to_ptr.vmem [resolvable:$true] %s36_s28 }
   0x7   :  { %s508_s10 = smov 16   ;;  %s509_s11 = smov [#allocation8]  }
   0x8   :  { %42 = dma.hbm_to_vmem [thread:$0]  %s35_s26, 2048, %s37_s28, [#allocation6], %s507_s9, %s507_s9, %s508_s10  }
   0x9   :  { %s60_s12 = sshll.u32 %s509_s11, 4  ;;  %s510_s13 = smov 128   ;;  %s61_s12 = int_to_ptr.vmem [resolvable:$true] %s60_s12 }
   0xa   :  { %s511_s14 = smov 8   ;;  %s24_s16 = sshll.u32 %s602_s0, 4  ;;  %s25_s16 = int_to_ptr.hbm [resolvable:$true] %s24_s16 }
   0xb   :  { %66 = dma.hbm_to_vmem [thread:$0]  %s59_s8, 384, %s61_s12, [#allocation9], %s510_s13, %s510_s13, %s511_s14  }
   0xc   :  { %s512_s17 = smov [#allocation2]   ;;  %s48_s20 = sshll.u32 %s604_s2, 4  ;;  %s49_s20 = int_to_ptr.hbm [resolvable:$true] %s48_s20 }
   0xd   :  { %s26_s3 = sshll.u32 %s512_s17, 4  ;;  %s513_s21 = smov [#allocation7]   ;;  %s27_s3 = int_to_ptr.vmem [resolvable:$true] %s26_s3 }
   0xe   :  { %29 = dma.hbm_to_vmem [thread:$0]  %s25_s16, 128, %s27_s3, [#allocation3]  }
   0xf   :  { %s50_s22 = sshll.u32 %s513_s21, 4  ;;  %s71_s25 = sshll.u32 %s606_s4, 4  ;;  %s51_s22 = int_to_ptr.vmem [resolvable:$true] %s50_s22  ;;  %s72_s25 = int_to_ptr.hbm [resolvable:$true] %s71_s25 }
  0x10   :  { %53 = dma.hbm_to_vmem [thread:$0]  %s49_s20, 256, %s51_s22, [#allocation6]  }
  0x11   :  { %s84_s27 = sshll.u32 %s607_s5, 4  ;;  %s514_s28 = smov [#allocation10]   ;;  %s85_s27 = int_to_ptr.hbm [resolvable:$true] %s84_s27 }
  0x12   :  { %s73_s29 = sshll.u32 %s514_s28, 4  ;;  %s515_s2 = smov [#allocation11]   ;;  %s74_s29 = int_to_ptr.vmem [resolvable:$true] %s73_s29 }
  0x13   :  { %79 = dma.hbm_to_vmem [thread:$0]  %s72_s25, 1024, %s74_s29, [#allocation9], %s510_s13, %s510_s13, %s511_s14  }
  0x14   :  { %s86_s30 = sshll.u32 %s515_s2, 4  ;;  %s87_s30 = int_to_ptr.vmem [resolvable:$true] %s86_s30 }
  0x15   :  { %92 = dma.hbm_to_vmem [thread:$0]  %s85_s27, 384, %s87_s30, [#allocation12], %s510_s13, %s510_s13, %s511_s14  }
  0x16   :  { %494 = dma.done.wait [#allocation3], 128  }
  0x17   :  { %495 = vsyncadd [#allocation3], 4294967168 }
  0x18   :  { %496 = dma.done.wait [#allocation6], 2304  }
  0x19   :  { %497 = vsyncadd [#allocation6], 4294964992 }
  0x1a   :  { %498 = dma.done.wait [#allocation9], 1408  }
  0x1b   :  { %499 = vsyncadd [#allocation9], 4294965888 }
  0x1c   :  { %500 = dma.done.wait [#allocation12], 384  }
  0x1d   :  { %501 = vsyncadd [#allocation12], 4294966912  ;;  %v194_v0 = vld [vmem:[#allocation10 + $0x38] sm:$0xff]  ;;  %v193_v1 = vld [vmem:[#allocation10 + $0x30] sm:$0xff]  ;;  %vm134_vm0 = vcmask 523264   ;;  %s516_s4 = smov [#allocation13]  }
  0x1e   :  { %282 = vmatpush.msra.mxu3 %v194_v0  ;;  %212 = vmatpush.msra.mxu2 %v194_v0  ;;  %v192_v2 = vld [vmem:[#allocation10 + $0x28] sm:$0xff]  ;;  %v133_v4 = vld [vmem:[#allocation5 + $0x78] sm:$0xff]  ;;  %v130_v5 = vld [vmem:[#allocation5 + $0x60] sm:$0xff]  ;;  %s244_s5 = sshll.u32 %s516_s4, 4  ;;  %s246_s10 = sshll.u32 %s608_s6, 4  ;;  %s245_s5 = int_to_ptr.vmem [resolvable:$true] %s244_s5  ;;  %s247_s10 = int_to_ptr.hbm [resolvable:$true] %s246_s10 }
  0x1f   :  { %v132_v3 = vld [vmem:[#allocation5 + $0x70] sm:$0xff]  ;;  %v191_v6 = vld [vmem:[#allocation10 + $0x20] sm:$0xff]  ;;  %166 = vmatpush.msra.mxu1 %v133_v4  ;;  %v129_v9 = vld [vmem:[#allocation5 + $0x58] sm:$0xff]  ;;  %s517_s6 = smov [#allocation14]   ;;  %s256_s15 = sshll.u32 %s609_s7, 4  ;;  %s257_s15 = int_to_ptr.hbm [resolvable:$true] %s256_s15 }
  0x20   :  { %283 = vmatpush.msra.mxu3 %v193_v1  ;;  %213 = vmatpush.msra.mxu2 %v193_v1  ;;  %v131_v7 = vld [vmem:[#allocation5 + $0x68] sm:$0xff]  ;;  %v128_v8 = vld [vmem:[#allocation5 + $0x50] sm:$0xff]  ;;  %v190_v10 = vld [vmem:[#allocation10 + $0x18] sm:$0xff]  ;;  %s254_s11 = sshll.u32 %s517_s6, 4  ;;  %s255_s11 = int_to_ptr.vmem [resolvable:$true] %s254_s11 }
  0x21   :  { %146 = vmatpush.msra.mxu0 %v132_v3  ;;  %167 = vmatpush.msra.mxu1 %v131_v7  ;;  %v126_v11 = vld [vmem:[#allocation5 + $0x40] sm:$0xff]  ;;  %v127_v12 = vld [vmem:[#allocation5 + $0x48] sm:$0xff]  ;;  %v189_v13 = vld [vmem:[#allocation10 + $0x10] sm:$0xff] }
  0x22   :  { %284 = vmatpush.msra.mxu3 %v192_v2  ;;  %214 = vmatpush.msra.mxu2 %v192_v2  ;;  %v124_v14 = vld [vmem:[#allocation5 + $0x30] sm:$0xff]  ;;  %v125_v15 = vld [vmem:[#allocation5 + $0x38] sm:$0xff]  ;;  %v122_v17 = vld [vmem:[#allocation5 + $0x20] sm:$0xff] }
  0x23   :  { %147 = vmatpush.msra.mxu0 %v130_v5  ;;  %168 = vmatpush.msra.mxu1 %v129_v9  ;;  %v188_v16 = vld [vmem:[#allocation10 + $0x8] sm:$0xff]  ;;  %v123_v18 = vld [vmem:[#allocation5 + $0x28] sm:$0xff]  ;;  %v185_v20 = vld [vmem:[#allocation8 + $0x8] sm:$0xff] }
  0x24   :  { %285 = vmatpush.msra.mxu3 %v191_v6  ;;  %215 = vmatpush.msra.mxu2 %v191_v6  ;;  %v187_v19 = vld [vmem:[#allocation10] sm:$0xff]  ;;  %v184_v21 = vld [vmem:[#allocation8] sm:$0xff]  ;;  %v121_v23 = vld [vmem:[#allocation5 + $0x18] sm:$0xff] }
  0x25   :  { %148 = vmatpush.msra.mxu0 %v128_v8  ;;  %169 = vmatpush.msra.mxu1 %v127_v12  ;;  %v120_v22 = vld [vmem:[#allocation5 + $0x10] sm:$0xff]  ;;  %v118_v24 = vld [vmem:[#allocation5] sm:$0xff]  ;;  %v119_v25 = vld [vmem:[#allocation5 + $0x8] sm:$0xff] }
  0x26   :  { %286 = vmatpush.msra.mxu3 %v190_v10  ;;  %216 = vmatpush.msra.mxu2 %v190_v10  ;;  %v117_v26 = vld [vmem:[#allocation2] sm:$0xff]  ;;  %v186_v27 = vld [vmem:[#allocation8 + $0x10] sm:$0xff]  ;;  %v179_v29 = vld [vmem:[#allocation7 + $0x8] sm:$0xff] }
  0x27   :  { %149 = vmatpush.msra.mxu0 %v126_v11  ;;  %170 = vmatpush.msra.mxu1 %v125_v15  ;;  %v178_v28 = vld [vmem:[#allocation7] sm:$0xff]  ;;  %v231_v30 = vld [vmem:[#allocation11 + $0x8] sm:$0xff]  ;;  %v230_v33 = vld [vmem:[#allocation11] sm:$0xff] }
  0x28   :  { %287 = vmatpush.msra.mxu3 %v189_v13  ;;  %217 = vmatpush.msra.mxu2 %v189_v13  ;;  %v232_v40 = vld [vmem:[#allocation11 + $0x10] sm:$0xff] }
  0x29   :  { %150 = vmatpush.msra.mxu0 %v124_v14  ;;  %171 = vmatpush.msra.mxu1 %v123_v18 }
  0x2a   :  { %288 = vmatpush.msra.mxu3 %v188_v16  ;;  %218 = vmatpush.msra.mxu2 %v188_v16 }
  0x2b   :  { %151 = vmatpush.msra.mxu0 %v122_v17  ;;  %172 = vmatpush.msra.mxu1 %v121_v23 }
  0x2c   :  { %289 = vmatpush.msra.mxu3 %v187_v19  ;;  %219 = vmatpush.msra.mxu2 %v187_v19 }
  0x2d   :  { %280 = vmatmul.msk.f32.vlgmr.msra.gmra.mxu3 %vm134_vm0, %v185_v20  ;;  %279 = vmatmul.msk.f32.vlgmr.msra.gmra.mxu2 %vm134_vm0, %v184_v21 }
  0x2e   :  { %152 = vmatpush.msra.mxu0 %v120_v22  ;;  %173 = vmatpush.msra.mxu1 %v119_v25 }
  0x2f   :  { %278 = vmatmul.msk.f32.vlgmr.msra.gmra.mxu1 %vm134_vm0, %v117_v26 }
  0x30   :  { %153 = vmatpush.msra.mxu0 %v118_v24 }
  0x31   :  { %277 = vmatmul.msk.f32.vlgmr.msra.gmra.mxu0 %vm134_vm0, %v117_v26 }
  0x35   :  { %281 = vmatmul.msk.f32.gmra.mxu3 %vm134_vm0, %v186_v27 }
  0xac   :  { %v175_v32 = vpop.f32.mrf.mxu1 }
  0xad   :  { %v181_v35 = vmul.f32 %v179_v29, %v175_v32 }
  0xae   :  { %v155_v31 = vpop.f32.mrf.mxu0 }
  0xaf   :  { %v180_v34 = vmul.f32 %v178_v28, %v155_v31  ;;  %183 = vst [vmem:[#allocation13 + $0x8] sm:$0xff] %v181_v35 }
  0xb0   :  { %v224_v36 = vpop.f32.mrf.mxu3  ;;  %v221_v37 = vpop.f32.mrf.mxu2 }
  0xb1   :  { %v234_v38 = vmul.f32 %v231_v30, %v224_v36  ;;  %182 = vst [vmem:[#allocation13] sm:$0xff] %v180_v34  ;;  %v233_v39 = vmul.f32 %v230_v33, %v221_v37 }
  0xb2   :  { %249 = dma.vmem_to_hbm [thread:$0]  %s245_s5, 256, %s247_s10, [#allocation4]  }
  0xb3   :  { %237 = vst.msk [vmem:[#allocation14 + $0x8] sm:$0xff] %vm134_vm0, %v234_v38 }
  0xb4   :  { %236 = vst.msk [vmem:[#allocation14] sm:$0xff] %vm134_vm0, %v233_v39 }
  0xb8   :  { %v227_v41 = vpop.f32.mrf.mxu3 }
  0xb9   :  { %v235_v42 = vmul.f32 %v232_v40, %v227_v41 }
  0xbb   :  { %238 = vst.msk [vmem:[#allocation14 + $0x10] sm:$0xff] %vm134_vm0, %v235_v42 }
  0xbc   :  { %262 = dma.vmem_to_hbm [thread:$0]  %s255_s11, 384, %s257_s15, [#allocation15], %s510_s13, %s510_s13, %s511_s14  }
  0xbd   :  { %502 = dma.done.wait [#allocation4], 256  }
  0xbe   :  { %503 = vsyncadd [#allocation4], 4294967040 }
  0xbf   :  { %504 = dma.done.wait [#allocation15], 384  }
  0xc0   :  { %505 = vsyncadd [#allocation15], 4294966912 }
  0xc1   :  { %271 = vsyncpa [#allocation3], 1 }
  0xc2   :  { %272 = vsyncpa [#allocation6], 1 }
  0xc3   :  { %273 = vsyncpa [#allocation9], 1 }
  0xc4   :  { %274 = vsyncpa [#allocation12], 1 }
  0xc5   :  { %275 = vsyncpa [#allocation4], 1 }
  0xc6   :  { %276 = vsyncpa [#allocation15], 1 }

</bundles_post_ra>
